<compile_context>
chip_gen: v6e
topology: v6e:2x2x1
jax: 0.10.0
libtpu: 0.0.40
codegen_flags: <defaults>
</compile_context>

<pallas_src>
import jax
import jax.numpy as jnp
from jax import lax
from jax.experimental import pallas as pl
from jax.experimental.pallas import tpu as pltpu

EPS = 1e-9


def _dice(x, alpha):
    # torch Dice: normalize over dim=0 (batch) with unbiased variance, then
    # alpha * x * (1 - p) + x * p  with p = sigmoid(norm_x).
    b = x.shape[0]
    mean = jnp.mean(x, axis=0, keepdims=True)
    var = jnp.sum((x - mean) ** 2, axis=0, keepdims=True) / (b - 1)  # unbiased
    norm = (x - mean) * lax.rsqrt(var + EPS)
    p = jax.nn.sigmoid(norm)
    return alpha * x * (1.0 - p) + x * p


def attention_pooling_kernel(q_ref, ub_ref, mask_ref,
                             w1q_ref, w1ub_ref, w1qub_ref, b1_ref,
                             w2_ref, b2_ref, w3_ref,
                             a1_ref, a2_ref, b3_ref,
                             out_ref,
                             qterm_ref):
    # Output block is the same for every S-tile -> resident accumulator.
    # The query contribution to FC1 is S-invariant -> compute once, keep in VMEM.
    @pl.when(pl.program_id(0) == 0)
    def _init():
        out_ref[...] = jnp.zeros_like(out_ref)
        qterm_ref[...] = (jnp.dot(q_ref[...], w1q_ref[...],
                                  preferred_element_type=jnp.float32)
                          + b1_ref[...])

    q = q_ref[...]        # (B, E)
    ub = ub_ref[...]      # (B, St, E)   current S tile
    mask = mask_ref[...]  # (B, St, 1)
    B, St, E = ub.shape
    D1 = w1ub_ref.shape[1]
    D2 = w2_ref.shape[1]

    a1 = a1_ref[0]
    a2 = a2_ref[0]
    b3 = b3_ref[0]

    # ---- FC1 (4E -> 32) via split weights; no (B,S,4E) concat/broadcast ----
    # cat([q, ub, q-ub, q*ub]) @ w1 == q@(w1a+w1c) + ub@(w1b-w1c) + (q*ub)@w1d
    ub2 = ub.reshape(B * St, E)
    qub2 = (q[:, None, :] * ub).reshape(B * St, E)
    h = (jnp.dot(ub2, w1ub_ref[...], preferred_element_type=jnp.float32)
         + jnp.dot(qub2, w1qub_ref[...], preferred_element_type=jnp.float32))
    h = h.reshape(B, St, D1) + qterm_ref[...][:, None, :]
    h = _dice(h, a1)
    # TODO(synk): nn.Dropout(p=0.2) is identity in eval mode; not implemented.

    # ---- FC2 (32 -> 16) + Dice ----
    h = jnp.dot(h.reshape(B * St, D1), w2_ref[...],
                preferred_element_type=jnp.float32) + b2_ref[...]
    h = _dice(h.reshape(B, St, D2), a2)

    # ---- FC3 (16 -> 1) on the VPU: broadcast-mul + lane reduce ----
    attn = jnp.sum(h * w3_ref[...], axis=-1, keepdims=True) + b3      # (B, St, 1)

    # ---- mask, weight behaviors, accumulate the sequence sum for this tile ----
    out_ref[...] += jnp.sum(ub * (attn * mask), axis=1)               # (B, E)


def _pick_s_tile(S, B, E, max_bytes=8 * 1024 * 1024):
    """Largest multiple-of-8 divisor of S under a conservative VMEM budget
    (covers the double-buffered ub + mask tiles); falls back to full S."""
    per_row = 2 * B * (E + 1) * 4  # two pipeline buffers, f32
    cap = max(8, min(512, max_bytes // per_row))
    if S <= cap:
        return S
    best = None
    for t in range(8, int(cap) + 1, 8):
        if S % t == 0:
            best = t
    return best if best is not None else S


# ---- index maps (no default-arg lambdas; explicit, signature-exact) ----
def _const2(si):
    return (0, 0)


def _tile3(si):
    return (0, si, 0)


def attention_pooling(query_ad, user_behavior, mask, params):
    """query_ad: (B, 1, E), user_behavior: (B, S, E), mask: (B, S, 1) -> (B, E)."""
    B, S, E = user_behavior.shape
    q2d = query_ad.reshape(B, E).astype(jnp.float32)
    ub = user_behavior.astype(jnp.float32)
    mask = mask.astype(jnp.float32)

    w1 = params["w1"].astype(jnp.float32)            # (4E, D1)
    d1 = w1.shape[1]
    w1_q = w1[0:E] + w1[2 * E:3 * E]                 # queries + (queries - ub) part
    w1_ub = w1[E:2 * E] - w1[2 * E:3 * E]            # ub - (queries - ub) part
    w1_qub = w1[3 * E:4 * E]                         # (queries * ub) part
    b1 = params["b1"].reshape(1, d1).astype(jnp.float32)

    w2 = params["w2"].astype(jnp.float32)            # (D1, D2)
    d2 = w2.shape[1]
    b2 = params["b2"].reshape(1, d2).astype(jnp.float32)

    w3_row = params["w3"].reshape(1, d2).astype(jnp.float32)   # (1, D2)
    b3 = params["b3"].reshape(1).astype(jnp.float32)           # scalar -> SMEM
    a1 = params["a1"].reshape(1).astype(jnp.float32)           # scalar -> SMEM
    a2 = params["a2"].reshape(1).astype(jnp.float32)           # scalar -> SMEM

    s_tile = _pick_s_tile(S, B, E)
    grid = (S // s_tile,)

    smem = pl.BlockSpec(memory_space=pltpu.MemorySpace.SMEM)

    return pl.pallas_call(
        attention_pooling_kernel,
        out_shape=jax.ShapeDtypeStruct((B, E), jnp.float32),
        grid=grid,
        in_specs=[
            pl.BlockSpec((B, E), _const2),                     # q (resident)
            pl.BlockSpec((B, s_tile, E), _tile3),              # ub (S-tiled)
            pl.BlockSpec((B, s_tile, 1), _tile3),              # mask (S-tiled)
            pl.BlockSpec((E, d1), _const2),                    # w1_q
            pl.BlockSpec((E, d1), _const2),                    # w1_ub
            pl.BlockSpec((E, d1), _const2),                    # w1_qub
            pl.BlockSpec((1, d1), _const2),                    # b1
            pl.BlockSpec((d1, d2), _const2),                   # w2
            pl.BlockSpec((1, d2), _const2),                    # b2
            pl.BlockSpec((1, d2), _const2),                    # w3 row
            smem, smem, smem,                                  # a1, a2, b3
        ],
        out_specs=pl.BlockSpec((B, E), _const2),               # accumulator
        scratch_shapes=[pltpu.VMEM((B, d1), jnp.float32)],     # q_term (S-invariant)
        compiler_params=pltpu.CompilerParams(
            dimension_semantics=("arbitrary",)),
    )(q2d, ub, mask, w1_q, w1_ub, w1_qub, b1, w2, b2, w3_row, a1, a2, b3)


def init_params(key, embedding_dim, fc_dims=(32, 16)):
    """Deterministic synthetic init matching the module's parameter shapes
    (weights stored pre-transposed as (in_dim, out_dim))."""
    k1, k2, k3, k4, k5 = jax.random.split(key, 5)
    in_dim = embedding_dim * 4
    d1, d2 = fc_dims
    return {
        "w1": jax.random.normal(k1, (in_dim, d1), jnp.float32) * 0.1,
        "b1": jax.random.normal(k4, (d1,), jnp.float32) * 0.05,
        "w2": jax.random.normal(k2, (d1, d2), jnp.float32) * 0.1,
        "b2": jax.random.normal(k5, (d2,), jnp.float32) * 0.05,
        "w3": jax.random.normal(k3, (d2, 1), jnp.float32) * 0.1,
        "b3": jnp.zeros((1,), jnp.float32),
        # Dice alpha params init to zero, exactly as in Dice.__init__
        "a1": jnp.zeros((1,), jnp.float32),
        "a2": jnp.zeros((1,), jnp.float32),
    }


def attention_pooling_reference(query_ad, user_behavior, mask, params):
    """Pure-JAX mirror of the PyTorch forward (eval mode)."""
    B, S, E = user_behavior.shape
    q = jnp.broadcast_to(query_ad, (B, S, E))
    x = jnp.concatenate([q, user_behavior, q - user_behavior, q * user_behavior],
                        axis=-1)

    def dice(x, alpha):
        mean = jnp.mean(x, axis=0, keepdims=True)
        var = jnp.sum((x - mean) ** 2, axis=0, keepdims=True) / (x.shape[0] - 1)
        norm = (x - mean) * lax.rsqrt(var + EPS)
        p = jax.nn.sigmoid(norm)
        return alpha * x * (1.0 - p) + x * p

    with jax.default_matmul_precision("highest"):
        h = x @ params["w1"] + params["b1"].reshape(1, -1)
        h = dice(h, params["a1"].reshape(())[None])
        h = h @ params["w2"] + params["b2"].reshape(1, -1)
        h = dice(h, params["a2"].reshape(())[None])
        attn = h @ params["w3"] + params["b3"].reshape(1, -1)
    attn = attn * mask
    return jnp.sum(user_behavior * attn, axis=1)


if __name__ == "__main__":
    B, S, E = 2, 8, 32
    key = jax.random.PRNGKey(0)
    kq, ku, km, kp = jax.random.split(key, 4)

    query_ad = jax.random.normal(kq, (B, 1, E), jnp.float32)
    user_behavior = jax.random.normal(ku, (B, S, E), jnp.float32)
    mask = (jax.random.uniform(km, (B, S, 1)) > 0.25).astype(jnp.float32)

    params = init_params(kp, E)

    out = attention_pooling(query_ad, user_behavior, mask, params)
    jax.block_until_ready(out)
    assert out.shape == (B, E)

    ref = attention_pooling_reference(query_ad, user_behavior, mask, params)
    max_err = float(jnp.max(jnp.abs(out - ref)))
    assert jnp.allclose(out, ref, atol=3e-3, rtol=3e-3), f"max_err={max_err}"

    print("KERNEL_OK")
</pallas_src>

<mosaic_0001>
module attributes {stable_mosaic.version = 11 : i64} {
  func.func @attention_pooling_kernel(%arg0: i32, %arg1: memref<2x32xf32, #tpu.memory_space<vmem>>, %arg2: memref<2x8x32xf32, #tpu.memory_space<vmem>>, %arg3: memref<2x8x1xf32, #tpu.memory_space<vmem>>, %arg4: memref<32x32xf32, #tpu.memory_space<vmem>>, %arg5: memref<32x32xf32, #tpu.memory_space<vmem>>, %arg6: memref<32x32xf32, #tpu.memory_space<vmem>>, %arg7: memref<1x32xf32, #tpu.memory_space<vmem>>, %arg8: memref<32x16xf32, #tpu.memory_space<vmem>>, %arg9: memref<1x16xf32, #tpu.memory_space<vmem>>, %arg10: memref<1x16xf32, #tpu.memory_space<vmem>>, %arg11: memref<1xf32, #tpu.memory_space<smem>>, %arg12: memref<1xf32, #tpu.memory_space<smem>>, %arg13: memref<1xf32, #tpu.memory_space<smem>>, %arg14: memref<2x32xf32, #tpu.memory_space<vmem>>, %arg15: memref<2x32xf32, #tpu.memory_space<vmem>>) attributes {dimension_semantics = [#tpu.dimension_semantics<arbitrary>], iteration_bounds = array<i64: 1>, scalar_prefetch = 0 : i64, scratch_operands = 1 : i64, tpu.core_type = #tpu.core_type<tc>, window_params = [{pipeline_mode = #tpu.pipeline_mode<synchronous>, transform_indices = @transform_0, window_bounds = array<i64: 2, 32>}, {transform_indices = @transform_1, window_bounds = array<i64: 2, 8, 32>}, {transform_indices = @transform_2, window_bounds = array<i64: 2, 8, 1>}, {pipeline_mode = #tpu.pipeline_mode<synchronous>, transform_indices = @transform_3, window_bounds = array<i64: 32, 32>}, {pipeline_mode = #tpu.pipeline_mode<synchronous>, transform_indices = @transform_4, window_bounds = array<i64: 32, 32>}, {pipeline_mode = #tpu.pipeline_mode<synchronous>, transform_indices = @transform_5, window_bounds = array<i64: 32, 32>}, {pipeline_mode = #tpu.pipeline_mode<synchronous>, transform_indices = @transform_6, window_bounds = array<i64: 1, 32>}, {pipeline_mode = #tpu.pipeline_mode<synchronous>, transform_indices = @transform_7, window_bounds = array<i64: 32, 16>}, {pipeline_mode = #tpu.pipeline_mode<synchronous>, transform_indices = @transform_8, window_bounds = array<i64: 1, 16>}, {pipeline_mode = #tpu.pipeline_mode<synchronous>, transform_indices = @transform_9, window_bounds = array<i64: 1, 16>}, {transform_indices = @transform_10, window_bounds = array<i64: 1>}, {transform_indices = @transform_11, window_bounds = array<i64: 1>}, {transform_indices = @transform_12, window_bounds = array<i64: 1>}, {pipeline_mode = #tpu.pipeline_mode<synchronous>, transform_indices = @transform_13, window_bounds = array<i64: 2, 32>}]} {
    %c0_i32 = arith.constant 0 : i32
    %0 = arith.cmpi eq, %arg0, %c0_i32 : i32
    %1 = arith.extui %0 : i1 to i32
    %c0_i32_0 = arith.constant 0 : i32
    %2 = arith.cmpi ne, %1, %c0_i32_0 : i32
    scf.if %2 {
      %cst_45 = arith.constant 0.000000e+00 : f32
      %106 = vector.broadcast %cst_45 : f32 to vector<2x32xf32>
      %c0_46 = arith.constant 0 : index
      %c0_47 = arith.constant 0 : index
      %107 = vector.load %arg14[%c0_46, %c0_47] : memref<2x32xf32, #tpu.memory_space<vmem>>, vector<2x32xf32>
      tpu.vector_store %arg14[%c0_46, %c0_47], %106 {strides = array<i32>} : memref<2x32xf32, #tpu.memory_space<vmem>>, vector<2x32xf32>,
      %c0_48 = arith.constant 0 : index
      %c0_49 = arith.constant 0 : index
      %108 = vector.load %arg1[%c0_48, %c0_49] : memref<2x32xf32, #tpu.memory_space<vmem>>, vector<2x32xf32>
      %c0_50 = arith.constant 0 : index
      %c0_51 = arith.constant 0 : index
      %109 = vector.load %arg4[%c0_50, %c0_51] : memref<32x32xf32, #tpu.memory_space<vmem>>, vector<32x32xf32>
      %cst_52 = arith.constant dense<0.000000e+00> : vector<2x32xf32>
      %110 = tpu.matmul %108, %109, %cst_52 {dimension_numbers = #tpu.dot_dimension_numbers<[1], [0], [0], [1], [0, 0, 1, 1], [], []>} : vector<2x32xf32>, vector<32x32xf32>, vector<2x32xf32> -> vector<2x32xf32>
      %c0_53 = arith.constant 0 : index
      %c0_54 = arith.constant 0 : index
      %111 = vector.load %arg7[%c0_53, %c0_54] : memref<1x32xf32, #tpu.memory_space<vmem>>, vector<1x32xf32>
      %112 = vector.broadcast %111 : vector<1x32xf32> to vector<2x32xf32>
      %113 = arith.addf %110, %112 : vector<2x32xf32>
      %c0_55 = arith.constant 0 : index
      %c0_56 = arith.constant 0 : index
      %114 = vector.load %arg15[%c0_55, %c0_56] : memref<2x32xf32, #tpu.memory_space<vmem>>, vector<2x32xf32>
      tpu.vector_store %arg15[%c0_55, %c0_56], %113 {strides = array<i32>} : memref<2x32xf32, #tpu.memory_space<vmem>>, vector<2x32xf32>,
    } else {
    }
    %c0 = arith.constant 0 : index
    %c0_1 = arith.constant 0 : index
    %3 = vector.load %arg1[%c0, %c0_1] : memref<2x32xf32, #tpu.memory_space<vmem>>, vector<2x32xf32>
    %c0_2 = arith.constant 0 : index
    %c0_3 = arith.constant 0 : index
    %c0_4 = arith.constant 0 : index
    %4 = vector.load %arg2[%c0_2, %c0_3, %c0_4] : memref<2x8x32xf32, #tpu.memory_space<vmem>>, vector<2x8x32xf32>
    %c0_5 = arith.constant 0 : index
    %c0_6 = arith.constant 0 : index
    %c0_7 = arith.constant 0 : index
    %5 = vector.load %arg3[%c0_5, %c0_6, %c0_7] : memref<2x8x1xf32, #tpu.memory_space<vmem>>, vector<2x8x1xf32>
    %c0_8 = arith.constant 0 : index
    %6 = memref.load %arg11[%c0_8] : memref<1xf32, #tpu.memory_space<smem>>
    %c0_9 = arith.constant 0 : index
    %7 = memref.load %arg12[%c0_9] : memref<1xf32, #tpu.memory_space<smem>>
    %c0_10 = arith.constant 0 : index
    %8 = memref.load %arg13[%c0_10] : memref<1xf32, #tpu.memory_space<smem>>
    %9 = vector.shape_cast %4 : vector<2x8x32xf32> to vector<16x32xf32>
    %10 = vector.shape_cast %3 : vector<2x32xf32> to vector<2x1x32xf32>
    %11 = vector.broadcast %10 : vector<2x1x32xf32> to vector<2x8x32xf32>
    %12 = arith.mulf %11, %4 : vector<2x8x32xf32>
    %13 = vector.shape_cast %12 : vector<2x8x32xf32> to vector<16x32xf32>
    %c0_11 = arith.constant 0 : index
    %c0_12 = arith.constant 0 : index
    %14 = vector.load %arg5[%c0_11, %c0_12] : memref<32x32xf32, #tpu.memory_space<vmem>>, vector<32x32xf32>
    %cst = arith.constant dense<0.000000e+00> : vector<16x32xf32>
    %15 = tpu.matmul %9, %14, %cst {dimension_numbers = #tpu.dot_dimension_numbers<[1], [0], [0], [1], [0, 0, 1, 1], [], []>} : vector<16x32xf32>, vector<32x32xf32>, vector<16x32xf32> -> vector<16x32xf32>
    %c0_13 = arith.constant 0 : index
    %c0_14 = arith.constant 0 : index
    %16 = vector.load %arg6[%c0_13, %c0_14] : memref<32x32xf32, #tpu.memory_space<vmem>>, vector<32x32xf32>
    %cst_15 = arith.constant dense<0.000000e+00> : vector<16x32xf32>
    %17 = tpu.matmul %13, %16, %cst_15 {dimension_numbers = #tpu.dot_dimension_numbers<[1], [0], [0], [1], [0, 0, 1, 1], [], []>} : vector<16x32xf32>, vector<32x32xf32>, vector<16x32xf32> -> vector<16x32xf32>
    %18 = arith.addf %15, %17 : vector<16x32xf32>
    %19 = vector.shape_cast %18 : vector<16x32xf32> to vector<2x8x32xf32>
    %c0_16 = arith.constant 0 : index
    %c0_17 = arith.constant 0 : index
    %20 = vector.load %arg15[%c0_16, %c0_17] : memref<2x32xf32, #tpu.memory_space<vmem>>, vector<2x32xf32>
    %21 = vector.shape_cast %20 : vector<2x32xf32> to vector<2x1x32xf32>
    %22 = vector.broadcast %21 : vector<2x1x32xf32> to vector<2x8x32xf32>
    %23 = arith.addf %19, %22 : vector<2x8x32xf32>
    %cst_18 = arith.constant dense<0.000000e+00> : vector<8x32xf32>
    %24 = vector.multi_reduction <add>, %23, %cst_18 [0] : vector<2x8x32xf32> to vector<8x32xf32>
    %25 = vector.shape_cast %24 : vector<8x32xf32> to vector<1x8x32xf32>
    %cst_19 = arith.constant 2.000000e+00 : f32
    %26 = vector.broadcast %cst_19 : f32 to vector<1x8x32xf32>
    %27 = arith.divf %25, %26 : vector<1x8x32xf32>
    %28 = vector.broadcast %27 : vector<1x8x32xf32> to vector<2x8x32xf32>
    %29 = arith.subf %23, %28 : vector<2x8x32xf32>
    %30 = arith.mulf %29, %29 : vector<2x8x32xf32>
    %cst_20 = arith.constant dense<0.000000e+00> : vector<8x32xf32>
    %31 = vector.multi_reduction <add>, %30, %cst_20 [0] : vector<2x8x32xf32> to vector<8x32xf32>
    %32 = vector.shape_cast %31 : vector<8x32xf32> to vector<1x8x32xf32>
    %cst_21 = arith.constant 1.000000e+00 : f32
    %33 = vector.broadcast %cst_21 : f32 to vector<1x8x32xf32>
    %34 = arith.divf %32, %33 : vector<1x8x32xf32>
    %35 = vector.broadcast %27 : vector<1x8x32xf32> to vector<2x8x32xf32>
    %36 = arith.subf %23, %35 : vector<2x8x32xf32>
    %cst_22 = arith.constant 9.99999971E-10 : f32
    %37 = vector.broadcast %cst_22 : f32 to vector<1x8x32xf32>
    %38 = arith.addf %34, %37 : vector<1x8x32xf32>
    %39 = math.rsqrt %38 : vector<1x8x32xf32>
    %40 = vector.broadcast %39 : vector<1x8x32xf32> to vector<2x8x32xf32>
    %41 = arith.mulf %36, %40 : vector<2x8x32xf32>
    %42 = arith.negf %41 : vector<2x8x32xf32>
    %43 = math.exp %42 : vector<2x8x32xf32>
    %cst_23 = arith.constant 1.000000e+00 : f32
    %44 = vector.broadcast %cst_23 : f32 to vector<2x8x32xf32>
    %45 = arith.addf %44, %43 : vector<2x8x32xf32>
    %46 = arith.divf %44, %45 : vector<2x8x32xf32>
    %47 = vector.broadcast %6 : f32 to vector<2x8x32xf32>
    %48 = arith.mulf %47, %23 : vector<2x8x32xf32>
    %cst_24 = arith.constant 1.000000e+00 : f32
    %49 = vector.broadcast %cst_24 : f32 to vector<2x8x32xf32>
    %50 = arith.subf %49, %46 : vector<2x8x32xf32>
    %51 = arith.mulf %48, %50 : vector<2x8x32xf32>
    %52 = arith.mulf %23, %46 : vector<2x8x32xf32>
    %53 = arith.addf %51, %52 : vector<2x8x32xf32>
    %54 = vector.shape_cast %53 : vector<2x8x32xf32> to vector<16x32xf32>
    %c0_25 = arith.constant 0 : index
    %c0_26 = arith.constant 0 : index
    %55 = vector.load %arg8[%c0_25, %c0_26] : memref<32x16xf32, #tpu.memory_space<vmem>>, vector<32x16xf32>
    %cst_27 = arith.constant dense<0.000000e+00> : vector<16x16xf32>
    %56 = tpu.matmul %54, %55, %cst_27 {dimension_numbers = #tpu.dot_dimension_numbers<[1], [0], [0], [1], [0, 0, 1, 1], [], []>} : vector<16x32xf32>, vector<32x16xf32>, vector<16x16xf32> -> vector<16x16xf32>
    %c0_28 = arith.constant 0 : index
    %c0_29 = arith.constant 0 : index
    %57 = vector.load %arg9[%c0_28, %c0_29] : memref<1x16xf32, #tpu.memory_space<vmem>>, vector<1x16xf32>
    %58 = vector.broadcast %57 : vector<1x16xf32> to vector<16x16xf32>
    %59 = arith.addf %56, %58 : vector<16x16xf32>
    %60 = vector.shape_cast %59 : vector<16x16xf32> to vector<2x8x16xf32>
    %cst_30 = arith.constant dense<0.000000e+00> : vector<8x16xf32>
    %61 = vector.multi_reduction <add>, %60, %cst_30 [0] : vector<2x8x16xf32> to vector<8x16xf32>
    %62 = vector.shape_cast %61 : vector<8x16xf32> to vector<1x8x16xf32>
    %cst_31 = arith.constant 2.000000e+00 : f32
    %63 = vector.broadcast %cst_31 : f32 to vector<1x8x16xf32>
    %64 = arith.divf %62, %63 : vector<1x8x16xf32>
    %65 = vector.broadcast %64 : vector<1x8x16xf32> to vector<2x8x16xf32>
    %66 = arith.subf %60, %65 : vector<2x8x16xf32>
    %67 = arith.mulf %66, %66 : vector<2x8x16xf32>
    %cst_32 = arith.constant dense<0.000000e+00> : vector<8x16xf32>
    %68 = vector.multi_reduction <add>, %67, %cst_32 [0] : vector<2x8x16xf32> to vector<8x16xf32>
    %69 = vector.shape_cast %68 : vector<8x16xf32> to vector<1x8x16xf32>
    %cst_33 = arith.constant 1.000000e+00 : f32
    %70 = vector.broadcast %cst_33 : f32 to vector<1x8x16xf32>
    %71 = arith.divf %69, %70 : vector<1x8x16xf32>
    %72 = vector.broadcast %64 : vector<1x8x16xf32> to vector<2x8x16xf32>
    %73 = arith.subf %60, %72 : vector<2x8x16xf32>
    %cst_34 = arith.constant 9.99999971E-10 : f32
    %74 = vector.broadcast %cst_34 : f32 to vector<1x8x16xf32>
    %75 = arith.addf %71, %74 : vector<1x8x16xf32>
    %76 = math.rsqrt %75 : vector<1x8x16xf32>
    %77 = vector.broadcast %76 : vector<1x8x16xf32> to vector<2x8x16xf32>
    %78 = arith.mulf %73, %77 : vector<2x8x16xf32>
    %79 = arith.negf %78 : vector<2x8x16xf32>
    %80 = math.exp %79 : vector<2x8x16xf32>
    %cst_35 = arith.constant 1.000000e+00 : f32
    %81 = vector.broadcast %cst_35 : f32 to vector<2x8x16xf32>
    %82 = arith.addf %81, %80 : vector<2x8x16xf32>
    %83 = arith.divf %81, %82 : vector<2x8x16xf32>
    %84 = vector.broadcast %7 : f32 to vector<2x8x16xf32>
    %85 = arith.mulf %84, %60 : vector<2x8x16xf32>
    %cst_36 = arith.constant 1.000000e+00 : f32
    %86 = vector.broadcast %cst_36 : f32 to vector<2x8x16xf32>
    %87 = arith.subf %86, %83 : vector<2x8x16xf32>
    %88 = arith.mulf %85, %87 : vector<2x8x16xf32>
    %89 = arith.mulf %60, %83 : vector<2x8x16xf32>
    %90 = arith.addf %88, %89 : vector<2x8x16xf32>
    %c0_37 = arith.constant 0 : index
    %c0_38 = arith.constant 0 : index
    %91 = vector.load %arg10[%c0_37, %c0_38] : memref<1x16xf32, #tpu.memory_space<vmem>>, vector<1x16xf32>
    %92 = vector.shape_cast %91 : vector<1x16xf32> to vector<1x1x16xf32>
    %93 = vector.broadcast %92 : vector<1x1x16xf32> to vector<2x8x16xf32>
    %94 = arith.mulf %90, %93 : vector<2x8x16xf32>
    %cst_39 = arith.constant dense<0.000000e+00> : vector<2x8xf32>
    %95 = vector.multi_reduction <add>, %94, %cst_39 [2] : vector<2x8x16xf32> to vector<2x8xf32>
    %96 = vector.shape_cast %95 : vector<2x8xf32> to vector<2x8x1xf32>
    %97 = vector.broadcast %8 : f32 to vector<2x8x1xf32>
    %98 = arith.addf %96, %97 : vector<2x8x1xf32>
    %c0_40 = arith.constant 0 : index
    %c0_41 = arith.constant 0 : index
    %99 = vector.load %arg14[%c0_40, %c0_41] : memref<2x32xf32, #tpu.memory_space<vmem>>, vector<2x32xf32>
    %100 = arith.mulf %98, %5 : vector<2x8x1xf32>
    %101 = vector.broadcast %100 : vector<2x8x1xf32> to vector<2x8x32xf32>
    %102 = arith.mulf %4, %101 : vector<2x8x32xf32>
    %cst_42 = arith.constant dense<0.000000e+00> : vector<2x32xf32>
    %103 = vector.multi_reduction <add>, %102, %cst_42 [1] : vector<2x8x32xf32> to vector<2x32xf32>
    %104 = arith.addf %99, %103 : vector<2x32xf32>
    %c0_43 = arith.constant 0 : index
    %c0_44 = arith.constant 0 : index
    %105 = vector.load %arg14[%c0_43, %c0_44] : memref<2x32xf32, #tpu.memory_space<vmem>>, vector<2x32xf32>
    tpu.vector_store %arg14[%c0_43, %c0_44], %104 {strides = array<i32>} : memref<2x32xf32, #tpu.memory_space<vmem>>, vector<2x32xf32>,
    return
  }
  func.func @transform_0(%arg0: i32) -> (i32, i32) {
    %c0_i32 = arith.constant 0 : i32
    %c0_i32_0 = arith.constant 0 : i32
    %c0_i32_1 = arith.constant 0 : i32
    return %c0_i32, %c0_i32_0 : i32, i32
  }
  func.func @transform_1(%arg0: i32) -> (i32, i32, i32) {
    %c0_i32 = arith.constant 0 : i32
    %c0_i32_0 = arith.constant 0 : i32
    %c0_i32_1 = arith.constant 0 : i32
    return %c0_i32, %arg0, %c0_i32_0 : i32, i32, i32
  }
  func.func @transform_2(%arg0: i32) -> (i32, i32, i32) {
    %c0_i32 = arith.constant 0 : i32
    %c0_i32_0 = arith.constant 0 : i32
    %c0_i32_1 = arith.constant 0 : i32
    return %c0_i32, %arg0, %c0_i32_0 : i32, i32, i32
  }
  func.func @transform_3(%arg0: i32) -> (i32, i32) {
    %c0_i32 = arith.constant 0 : i32
    %c0_i32_0 = arith.constant 0 : i32
    %c0_i32_1 = arith.constant 0 : i32
    return %c0_i32, %c0_i32_0 : i32, i32
  }
  func.func @transform_4(%arg0: i32) -> (i32, i32) {
    %c0_i32 = arith.constant 0 : i32
    %c0_i32_0 = arith.constant 0 : i32
    %c0_i32_1 = arith.constant 0 : i32
    return %c0_i32, %c0_i32_0 : i32, i32
  }
  func.func @transform_5(%arg0: i32) -> (i32, i32) {
    %c0_i32 = arith.constant 0 : i32
    %c0_i32_0 = arith.constant 0 : i32
    %c0_i32_1 = arith.constant 0 : i32
    return %c0_i32, %c0_i32_0 : i32, i32
  }
  func.func @transform_6(%arg0: i32) -> (i32, i32) {
    %c0_i32 = arith.constant 0 : i32
    %c0_i32_0 = arith.constant 0 : i32
    %c0_i32_1 = arith.constant 0 : i32
    return %c0_i32, %c0_i32_0 : i32, i32
  }
  func.func @transform_7(%arg0: i32) -> (i32, i32) {
    %c0_i32 = arith.constant 0 : i32
    %c0_i32_0 = arith.constant 0 : i32
    %c0_i32_1 = arith.constant 0 : i32
    return %c0_i32, %c0_i32_0 : i32, i32
  }
  func.func @transform_8(%arg0: i32) -> (i32, i32) {
    %c0_i32 = arith.constant 0 : i32
    %c0_i32_0 = arith.constant 0 : i32
    %c0_i32_1 = arith.constant 0 : i32
    return %c0_i32, %c0_i32_0 : i32, i32
  }
  func.func @transform_9(%arg0: i32) -> (i32, i32) {
    %c0_i32 = arith.constant 0 : i32
    %c0_i32_0 = arith.constant 0 : i32
    %c0_i32_1 = arith.constant 0 : i32
    return %c0_i32, %c0_i32_0 : i32, i32
  }
  func.func @transform_10(%arg0: i32) -> i32 {
    %c0_i32 = arith.constant 0 : i32
    %c0_i32_0 = arith.constant 0 : i32
    return %c0_i32 : i32
  }
  func.func @transform_11(%arg0: i32) -> i32 {
    %c0_i32 = arith.constant 0 : i32
    %c0_i32_0 = arith.constant 0 : i32
    return %c0_i32 : i32
  }
  func.func @transform_12(%arg0: i32) -> i32 {
    %c0_i32 = arith.constant 0 : i32
    %c0_i32_0 = arith.constant 0 : i32
    return %c0_i32 : i32
  }
  func.func @transform_13(%arg0: i32) -> (i32, i32) {
    %c0_i32 = arith.constant 0 : i32
    %c0_i32_0 = arith.constant 0 : i32
    %c0_i32_1 = arith.constant 0 : i32
    return %c0_i32, %c0_i32_0 : i32, i32
  }
}

</mosaic_0001>

<bundles_post_ra>
// kernel: tpu_custom_call.1
= control target key start
LH: loop header
LB: loop body
LE: loop exit
PB: predicated region body
PF: predicated region fallthrough
CT: control target
= control target key end

     0   :  { %21 = vsyncpa [#allocation7], 0  ;;  %s1068_s0 = inlined_call_operand.hbm [shape: f32[2,32], index: 0, kind: input, shape index: {}]   ;;  %s1069_s1 = inlined_call_operand.hbm [shape: f32[2,8,32], index: 1, kind: input, shape index: {}]   ;;  %s1070_s2 = inlined_call_operand.vmem [shape: f32[2,8,1], index: 2, kind: input, shape index: {}]   ;;  %s1071_s3 = inlined_call_operand.vmem [shape: f32[32,32], index: 3, kind: input, shape index: {}]   ;;  %s1072_s4 = inlined_call_operand.vmem [shape: f32[32,32], index: 4, kind: input, shape index: {}]   ;;  %s1073_s5 = inlined_call_operand.hbm [shape: f32[32,32], index: 5, kind: input, shape index: {}]   ;;  %s1074_s6 = inlined_call_operand.vmem [shape: f32[1,32], index: 6, kind: input, shape index: {}]   ;;  %s1075_s7 = inlined_call_operand.vmem [shape: f32[32,16], index: 7, kind: input, shape index: {}]   ;;  %s1076_s8 = inlined_call_operand.vmem [shape: f32[1,16], index: 8, kind: input, shape index: {}]   ;;  %s1077_s9 = inlined_call_operand.vmem [shape: f32[1,16], index: 9, kind: input, shape index: {}]   ;;  %s1078_s10 = inlined_call_operand.<no memory space> [shape: f32[1], index: 10, kind: input, shape index: {}]   ;;  %s1079_s11 = inlined_call_operand.<no memory space> [shape: f32[1], index: 11, kind: input, shape index: {}]   ;;  %s1080_s12 = inlined_call_operand.<no memory space> [shape: f32[1], index: 12, kind: input, shape index: {}]   ;;  %s1081_s13 = inlined_call_operand.hbm [shape: f32[2,32], index: 13, kind: output, shape index: {}]  }
   0x1   :  { %22 = vsyncpa [#allocation10], 0 }
   0x2   :  { %23 = vsyncpa [#allocation8], 0  ;;  %s872_s25 = smov [#allocation9]  }
   0x3   :  { %s39_s26 = sshll.u32 %s872_s25, 4  ;;  %s40_s26 = int_to_ptr.vmem [resolvable:$true] %s39_s26 }
   0x4   :  { %s794_s27 = scalar_lea.vmem %s40_s26, 256  ;;  %p799_p1 = scmp.lt.s32.totalorder %s40_s26, %s40_s26 }
   0x5   :  { %p795_p0 = scmp.ne.s32.totalorder %s40_s26, %s794_s27  ;;  %p800_p2 = scmp.lt.s32.totalorder %s794_s27, %s794_s27 }
   0x7   :  { %p801_p3 = por %p800_p2, %p799_p1 }
   0x9   :  { %p802_p4 = pnand %p801_p3, %p795_p0 }
   0xb   :  { %805 = shalt.err (!%p802_p4)
}
   0xc   :  { %s873_s28 = smov 128   ;;  %s874_s29 = smov 8  }
   0xd   :  { %45 = dma.hbm_to_vmem [thread:$0]  %s1069_s1, 256, %s40_s26, [#allocation10], %s873_s28, %s873_s28, %s874_s29  }
   0xe   :  { %s875_s15 = smov [#allocation6]   ;;  %s876_s17 = smov [#allocation11]  }
   0xf   :  { %s30_s16 = sshll.u32 %s875_s15, 4  ;;  %s57_s18 = sshll.u32 %s876_s17, 4  ;;  %s31_s16 = int_to_ptr.vmem [resolvable:$true] %s30_s16  ;;  %s58_s18 = int_to_ptr.vmem [resolvable:$true] %s57_s18 }
  0x10   :  { %s814_s19 = scalar_lea.vmem %s31_s16, 32  ;;  %p819_p6 = scmp.lt.s32.totalorder %s31_s16, %s31_s16 }
  0x11   :  { %p815_p5 = scmp.ne.s32.totalorder %s31_s16, %s814_s19  ;;  %p820_p7 = scmp.lt.s32.totalorder %s814_s19, %s814_s19 }
  0x13   :  { %p821_p8 = por %p820_p7, %p819_p6 }
  0x15   :  { %p822_p9 = pnand %p821_p8, %p815_p5 }
  0x17   :  { %825 = shalt.err (!%p822_p9)
}
  0x18   :  { %33 = dma.hbm_to_vmem [thread:$0]  %s1068_s0, 32, %s31_s16, [#allocation7]  }
  0x19   :  { %s834_s22 = scalar_lea.vmem %s58_s18, 512  ;;  %p839_p11 = scmp.lt.s32.totalorder %s58_s18, %s58_s18 }
  0x1a   :  { %p835_p10 = scmp.ne.s32.totalorder %s58_s18, %s834_s22  ;;  %p840_p12 = scmp.lt.s32.totalorder %s834_s22, %s834_s22 }
  0x1c   :  { %p841_p13 = por %p840_p12, %p839_p11 }
  0x1e   :  { %p842_p0 = pnand %p841_p13, %p835_p10 }
  0x20   :  { %845 = shalt.err (!%p842_p0)
}
  0x21   :  { %63 = dma.hbm_to_vmem [thread:$0]  %s1073_s5, 512, %s58_s18, [#allocation10], %s873_s28, %s873_s28, %s874_s29  }
  0x22   :  { %866 = dma.done.wait [#allocation7], 32  }
  0x23   :  { %867 = vsyncadd [#allocation7], 4294967264 }
  0x24   :  { %868 = dma.done.wait [#allocation10], 768  }
  0x25   :  { %869 = vsyncadd [#allocation10], 4294966528  ;;  %v200_v0 = vlaneseq  ;;  %v877_v1 = vmov 0.0   ;;  %vm878_vm0 = vmmov 0   ;;  %vm91_vm1 = vcmask 254976   ;;  %v97_v6 = vld [vmem:[%s1071_s3 + $0x18] sm:$0xff] }
  0x26   :  { %710 = vmatprep.subr.mxu0 %v877_v1  ;;  %718 = vmatprep.mubr.msk.f32.mxu0 %vm878_vm0, %v877_v1  ;;  %v879_v2 = vmov 1966171168   ;;  %92 = vst.msk [vmem:[#allocation12] sm:$0x3] %vm91_vm1, %v877_v1  ;;  %v96_v7 = vld [vmem:[%s1071_s3 + $0x10] sm:$0xff]  ;;  %v95_v10 = vld [vmem:[%s1071_s3 + $0x8] sm:$0xff] }
  0x27   :  { %v198_v3 = vunpack.c.l.s4 %v879_v2  ;;  %v201_v5 = vshrl.u32 %v200_v0, 7  ;;  %711 = vmatpush3.msra.mxu0 %v97_v6  ;;  %v230_v8 = vld [vmem:[#allocation11 + $0x18] sm:$0xff]  ;;  %v229_v11 = vld [vmem:[#allocation11 + $0x10] sm:$0xff]  ;;  %v228_v12 = vld [vmem:[#allocation11 + $0x8] sm:$0xff]  ;;  %vm105_vm2 = vcmask 261120   ;;  %vm561_vm3 = vcmask 130048  }
  0x28   :  { %712 = vmatprep.subr.mxu0 %v877_v1  ;;  %721 = vmatprep.subr.mxu1 %v230_v8  ;;  %v94_v14 = vld [vmem:[%s1071_s3] sm:$0xff]  ;;  %v226_v17 = vld [vmem:[%s1072_s4 + $0x18] sm:$0xff]  ;;  %v225_v22 = vld [vmem:[%s1072_s4 + $0x10] sm:$0xff]  ;;  %vm649_vm4 = vcmask 1041409  }
  0x29   :  { %v199_v4 = vunpack.c.0.s8 %v198_v3  ;;  %713 = vmatpush3.msra.mxu0 %v96_v7  ;;  %722 = vmatpush3.msra.mxu1 %v230_v8  ;;  %v973_v13 = vsub.s32 0, %v201_v5  ;;  %v673_v15 = vld.sshfl [vmem:[#allocation6] sm:$0x11 pattern:$0x75316420]  ;;  %v227_v20 = vld [vmem:[#allocation11] sm:$0xff] }
  0x2a   :  { %714 = vmatprep.subr.mxu0 %v877_v1  ;;  %723 = vmatprep.subr.mxu1 %v229_v11  ;;  %v93_v16 = vld [vmem:[#allocation6] sm:$0x3]  ;;  %v196_v18 = vcombine.high %v673_v15, %v673_v15  ;;  %v982_v21 = vld [vmem:[#allocation9] sm:$0xff]  ;;  %v990_v25 = vld [vmem:[#allocation9 + $0x8] sm:$0xff] }
  0x2b   :  { %v968_v9 = vsub.s32 %v199_v4, %v201_v5  ;;  %715 = vmatpush3.msra.mxu0 %v95_v10  ;;  %724 = vmatpush3.msra.mxu1 %v229_v11  ;;  %v224_v26 = vld [vmem:[%s1072_s4 + $0x8] sm:$0xff]  ;;  %v223_v29 = vld [vmem:[%s1072_s4] sm:$0xff]  ;;  %v472_v31 = vld [vmem:[%s1075_s7 + $0x18] sm:$0xff]  ;;  %v458_v10 = vstv %s1078_s10 }
  0x2c   :  { %716 = vmatprep.subr.mxu0 %v877_v1  ;;  %725 = vmatprep.subr.mxu1 %v228_v12  ;;  %v471_v32 = vld [vmem:[%s1075_s7 + $0x10] sm:$0xff]  ;;  %v470_v33 = vld [vmem:[%s1075_s7 + $0x8] sm:$0xff]  ;;  %v469_v34 = vld [vmem:[%s1075_s7] sm:$0xff] }
  0x2d   :  { %v203_v19 = vrot.slane %v673_v15, %v968_v9  ;;  %717 = vmatpush3.msra.mxu0 %v94_v14  ;;  %726 = vmatpush3.msra.mxu1 %v228_v12  ;;  %v210_v23 = vrot.slane %v196_v18, %v968_v9  ;;  %v671_v35 = vld [vmem:[%s1074_s6] ss:$0 sm:$0xff] }
  0x2e   :  { %719 = vmatmul.mubr.msk.f32.vlgmr.msra.gmra.mxu0 %vm105_vm2, %v93_v16  ;;  %732 = vmatprep.subr.mxu0 %v226_v17 }
  0x2f   :  { %v214_v24 = vrot.slane %v203_v19, %v973_v13  ;;  %733 = vmatpush3.msra.mxu0 %v226_v17  ;;  %727 = vmatprep.subr.mxu1 %v227_v20  ;;  %v218_v28 = vrot.slane %v210_v23, %v973_v13 }
  0x30   :  { %734 = vmatprep.subr.mxu0 %v225_v22  ;;  %728 = vmatpush3.msra.mxu1 %v227_v20 }
  0x31   :  { %v221_v27 = vmul.f32 %v214_v24, %v982_v21  ;;  %735 = vmatpush3.msra.mxu0 %v225_v22  ;;  %v222_v30 = vmul.f32 %v218_v28, %v990_v25  ;;  %740 = vmatprep.mubr.msk.f32.mxu0 %vm105_vm2, %v982_v21  ;;  %v681_v24 = vld [vmem:[%s1076_s8] ss:$0 sm:$0xff] }
  0x32   :  { %736 = vmatprep.subr.mxu0 %v224_v26  ;;  %743 = vmatprep.subr.mxu1 %v472_v31 }
  0x33   :  { %729 = vmatprep.mubr.msk.f32.mxu1 %vm105_vm2, %v221_v27  ;;  %737 = vmatpush3.msra.mxu0 %v224_v26 }
  0x34   :  { %730 = vmatmul.mubr.msk.f32.vlgmr.msra.gmra.mxu1 %vm105_vm2, %v222_v30  ;;  %738 = vmatprep.subr.mxu0 %v223_v29 }
  0x35   :  { %739 = vmatpush3.msra.mxu0 %v223_v29  ;;  %744 = vmatpush3.msra.mxu1 %v472_v31 }
  0x36   :  { %741 = vmatmul.mubr.msk.f32.vlgmr.msra.gmra.mxu0 %vm105_vm2, %v990_v25  ;;  %745 = vmatprep.subr.mxu1 %v471_v32 }
  0x37   :  { %746 = vmatpush3.msra.mxu1 %v471_v32 }
  0x38   :  { %747 = vmatprep.subr.mxu1 %v470_v33 }
  0x39   :  { %748 = vmatpush3.msra.mxu1 %v470_v33 }
  0x3a   :  { %749 = vmatprep.subr.mxu1 %v469_v34 }
  0x3b   :  { %750 = vmatpush3.msra.mxu1 %v469_v34 }
  0xee   :  { %v175_v36 = vpop.f32.mrf.mxu0 }
  0xef   :  { %v176_v37 = vadd.f32 %v671_v35, %v175_v36 }
  0xf0   :  { %v720_v38 = vpop.f32.mrf.mxu0 }
  0xf1   :  { %179 = vst.msk [vmem:[#allocation2] sm:$0x3] %vm91_vm1, %v176_v37 }
  0xf4   :  { %v731_v39 = vpop.f32.mrf.mxu1 }
  0xf6   :  { %v742_v40 = vpop.f32.mrf.mxu0  ;;  %v304_v41 = vpop.f32.mrf.mxu1 }
  0xf7   :  { %v391_v49 = vadd.f32 %v742_v40, %v731_v39 }
  0xf8   :  { %v678_v42 = vld.sshfl [vmem:[#allocation2] sm:$0x11 pattern:$0x75316420]  ;;  %v385_v43 = vpop.f32.mrf.mxu0 }
  0xf9   :  { %v403_v44 = vcombine.high %v678_v42, %v678_v42  ;;  %v386_v45 = vadd.f32 %v385_v43, %v304_v41  ;;  %v410_v46 = vrot.slane %v678_v42, %v968_v9 }
  0xfb   :  { %v417_v47 = vrot.slane %v403_v44, %v968_v9  ;;  %v421_v48 = vrot.slane %v410_v46, %v973_v13 }
  0xfd   :  { %v425_v50 = vrot.slane %v417_v47, %v973_v13  ;;  %v428_v51 = vadd.f32 %v421_v48, %v386_v45 }
  0xff   :  { %v429_v52 = vadd.f32 %v425_v50, %v391_v49  ;;  %v430_v54 = vsel %vm105_vm2, %v428_v51, 0.0  ;;  %v459_v13 = vmul.f32 %v458_v10, %v428_v51 }
 0x101   :  { %v431_v53 = vsel %vm105_vm2, %v429_v52, 0.0  ;;  %v460_v15 = vmul.f32 %v458_v10, %v429_v52 }
 0x102   :  { %v432_v55 = vadd.f32 %v431_v53, %v430_v54 }
 0x104   :  { %v434_v56 = vmul.f32 0.5, %v432_v55 }
 0x106   :  { %v435_v57 = vsub.f32 %v428_v51, %v434_v56  ;;  %v436_v58 = vsub.f32 %v429_v52, %v434_v56 }
 0x108   :  { %v437_v59 = vmul.f32 %v435_v57, %v435_v57  ;;  %v438_v60 = vmul.f32 %v436_v58, %v436_v58 }
 0x10a   :  { %v439_v61 = vsel %vm105_vm2, %v437_v59, 0.0  ;;  %v440_v62 = vsel %vm105_vm2, %v438_v60, 0.0  ;;  %v686_v60 = vld [vmem:[%s1077_s9] ss:$0 sm:$0xff] }
 0x10b   :  { %v441_v63 = vadd.f32 %v440_v62, %v439_v61 }
 0x10d   :  { %v442_v0 = vadd.f32 1e-09, %v441_v63 }
 0x10f   :  { %766 = vrsqrt.f32 %v442_v0 }
 0x11c   :  { %v767_v1 = vpop.eup %766 }
 0x11d   :  { %v444_v2 = vmul.f32 %v767_v1, %v435_v57  ;;  %v445_v3 = vmul.f32 %v767_v1, %v436_v58 }
 0x11f   :  { %v679_v4 = vmul.f32 -1.442695, %v444_v2  ;;  %v680_v5 = vmul.f32 -1.442695, %v445_v3 }
 0x121   :  { %768 = vpow2.f32 %v679_v4 }
 0x122   :  { %770 = vpow2.f32 %v680_v5  ;;  %v880_v5 = vmov 0  }
 0x123   :  { %764 = vset.pattern.permute.xlu1 %v880_v5  ;;  %765 = vset.pattern.permute.xlu0 %v880_v5 }
 0x12e   :  { %v769_v6 = vpop.eup %768 }
 0x12f   :  { %v771_v7 = vpop.eup %770  ;;  %v452_v8 = vadd.f32 1.0, %v769_v6  ;;  %v615_v6 = vstv %s1080_s12 }
 0x130   :  { %v453_v9 = vadd.f32 1.0, %v771_v7 }
 0x131   :  { %772 = vrcp.f32 %v452_v8  ;;  %v183_v8 = vld [vmem:[%s1070_s2] sm:$0xff] }
 0x132   :  { %774 = vrcp.f32 %v453_v9 }
 0x13e   :  { %v773_v11 = vpop.eup %772 }
 0x13f   :  { %v775_v12 = vpop.eup %774  ;;  %v461_v14 = vsub.f32 1.0, %v773_v11  ;;  %v465_v18 = vmul.f32 %v773_v11, %v428_v51  ;;  %v589_v51 = vstv %s1079_s11  ;;  %v184_v11 = vld [vmem:[%s1070_s2 + $0x8] sm:$0xff]  ;;  %s881_s2 = smov [#allocation12]  }
 0x140   :  { %v462_v16 = vsub.f32 1.0, %v775_v12  ;;  %v466_v20 = vmul.f32 %v775_v12, %v429_v52  ;;  %s661_s12 = sshll.u32 %s881_s2, 4  ;;  %s662_s12 = int_to_ptr.vmem [resolvable:$true] %s661_s12 }
 0x141   :  { %v463_v17 = vmul.f32 %v461_v14, %v459_v13  ;;  %s846_s16 = scalar_lea.vmem %s662_s12, 32  ;;  %p851_p2 = scmp.lt.s32.totalorder %s662_s12, %s662_s12 }
 0x142   :  { %v464_v19 = vmul.f32 %v462_v16, %v460_v15  ;;  %p847_p1 = scmp.ne.s32.totalorder %s662_s12, %s846_s16  ;;  %p852_p3 = scmp.lt.s32.totalorder %s846_s16, %s846_s16 }
 0x143   :  { %v467_v22 = vadd.f32 %v465_v18, %v463_v17 }
 0x144   :  { %v468_v23 = vadd.f32 %v466_v20, %v464_v19  ;;  %p853_p4 = por %p852_p3, %p851_p2 }
 0x145   :  { %751 = vmatprep.mubr.msk.f32.mxu1 %vm105_vm2, %v467_v22 }
 0x146   :  { %752 = vmatmul.mubr.msk.f32.vlgmr.msra.gmra.mxu1 %vm105_vm2, %v468_v23  ;;  %p854_p5 = pnand %p853_p4, %p847_p1 }
 0x206   :  { %v753_v26 = vpop.f32.mrf.mxu1 }
 0x207   :  { %v558_v27 = vadd.f32 %v753_v26, %v681_v24 }
 0x208   :  { %v552_v28 = vpop.f32.mrf.mxu1 }
 0x209   :  { %v553_v29 = vadd.f32 %v681_v24, %v552_v28  ;;  %v563_v30 = vsel %vm561_vm3, %v558_v27, 0.0  ;;  %v591_v56 = vmul.f32 %v589_v51, %v558_v27 }
 0x20b   :  { %v562_v31 = vsel %vm561_vm3, %v553_v29, 0.0  ;;  %v590_v54 = vmul.f32 %v589_v51, %v553_v29 }
 0x20c   :  { %v564_v32 = vadd.f32 %v563_v30, %v562_v31 }
 0x20e   :  { %v565_v33 = vmul.f32 0.5, %v564_v32 }
 0x210   :  { %v566_v34 = vsub.f32 %v553_v29, %v565_v33  ;;  %v567_v35 = vsub.f32 %v558_v27, %v565_v33 }
 0x212   :  { %v568_v36 = vmul.f32 %v566_v34, %v566_v34  ;;  %v569_v37 = vmul.f32 %v567_v35, %v567_v35 }
 0x214   :  { %v570_v38 = vsel %vm561_vm3, %v568_v36, 0.0  ;;  %v571_v39 = vsel %vm561_vm3, %v569_v37, 0.0 }
 0x215   :  { %v572_v40 = vadd.f32 %v571_v39, %v570_v38 }
 0x217   :  { %v573_v41 = vadd.f32 1e-09, %v572_v40 }
 0x219   :  { %776 = vrsqrt.f32 %v573_v41 }
 0x226   :  { %v777_v42 = vpop.eup %776 }
 0x227   :  { %v575_v43 = vmul.f32 %v777_v42, %v566_v34  ;;  %v576_v44 = vmul.f32 %v777_v42, %v567_v35  ;;  %v618_v34 = vld [vmem:[#allocation12] sm:$0x3] }
 0x229   :  { %v684_v45 = vmul.f32 -1.442695, %v575_v43  ;;  %v685_v46 = vmul.f32 -1.442695, %v576_v44 }
 0x22b   :  { %778 = vpow2.f32 %v684_v45 }
 0x22c   :  { %780 = vpow2.f32 %v685_v46 }
 0x238   :  { %v779_v47 = vpop.eup %778 }
 0x239   :  { %v781_v48 = vpop.eup %780  ;;  %v583_v49 = vadd.f32 1.0, %v779_v47 }
 0x23a   :  { %v584_v50 = vadd.f32 1.0, %v781_v48 }
 0x23b   :  { %782 = vrcp.f32 %v583_v49 }
 0x23c   :  { %784 = vrcp.f32 %v584_v50 }
 0x248   :  { %v783_v52 = vpop.eup %782 }
 0x249   :  { %v785_v53 = vpop.eup %784  ;;  %v592_v55 = vsub.f32 1.0, %v783_v52  ;;  %v596_v59 = vmul.f32 %v783_v52, %v553_v29 }
 0x24a   :  { %v593_v57 = vsub.f32 1.0, %v785_v53  ;;  %v597_v62 = vmul.f32 %v785_v53, %v558_v27 }
 0x24b   :  { %v594_v58 = vmul.f32 %v592_v55, %v590_v54 }
 0x24c   :  { %v595_v61 = vmul.f32 %v593_v57, %v591_v56 }
 0x24d   :  { %v598_v63 = vadd.f32 %v596_v59, %v594_v58 }
 0x24e   :  { %v599_v0 = vadd.f32 %v597_v62, %v595_v61 }
 0x24f   :  { %v607_v1 = vmul.f32 %v686_v60, %v598_v63 }
 0x250   :  { %v608_v3 = vmul.f32 %v686_v60, %v599_v0 }
 0x251   :  { %v609_v2 = vsel %vm561_vm3, %v607_v1, 0.0 }
 0x252   :  { %610 = vadd.xlane.f32.xlu0 %v609_v2  ;;  %v612_v4 = vsel %vm561_vm3, %v608_v3, 0.0 }
 0x256   :  { %613 = vadd.xlane.f32.xlu0 %v612_v4 }
 0x2db   :  { %v611_v7 = vpop.xlane.xlu0 %610 }
 0x2dc   :  { %v616_v9 = vadd.f32 %v615_v6, %v611_v7 }
 0x2de   :  { %v619_v10 = vmul.f32 %v616_v9, %v183_v8 }
 0x2df   :  { %v614_v12 = vpop.xlane.xlu0 %613 }
 0x2e0   :  { %v617_v13 = vadd.f32 %v615_v6, %v614_v12  ;;  %623 = vperm.xlu1 %764, %v619_v10  }
 0x2e2   :  { %v620_v14 = vmul.f32 %v617_v13, %v184_v11 }
 0x2e4   :  { %628 = vperm.xlu1 %764, %v620_v14  }
 0x35b   :  { %v624_v15 = vpop.permute.xlu1 %623 }
 0x35c   :  { %v631_v16 = vmul.f32 %v624_v15, %v982_v21 }
 0x35e   :  { %v633_v17 = vsel %vm105_vm2, %v631_v16, 0.0 }
 0x35f   :  { %v634_v18 = vrot.slane %v633_v17, 4  ;;  %v629_v19 = vpop.permute.xlu1 %628 }
 0x360   :  { %v632_v20 = vmul.f32 %v629_v19, %v990_v25 }
 0x361   :  { %v635_v22 = vadd.f32 %v634_v18, %v633_v17 }
 0x362   :  { %v640_v23 = vsel %vm105_vm2, %v632_v20, 0.0 }
 0x363   :  { %v636_v24 = vrot.slane %v635_v22, 2  ;;  %v641_v26 = vrot.slane %v640_v23, 4 }
 0x365   :  { %v637_v27 = vadd.f32 %v636_v24, %v635_v22  ;;  %v642_v28 = vadd.f32 %v641_v26, %v640_v23 }
 0x367   :  { %v643_v29 = vrot.slane %v642_v28, 2  ;;  %v638_v30 = vrot.slane %v637_v27, 1 }
 0x369   :  { %v644_v31 = vadd.f32 %v643_v29, %v642_v28  ;;  %v639_v33 = vadd.f32 %v638_v30, %v637_v27 }
 0x36b   :  { %v645_v32 = vrot.slane %v644_v31, 1 }
 0x36d   :  { %v646_v21 = vadd.f32 %v645_v32, %v644_v31 }
 0x36f   :  { %v650_v35 = vsel %vm649_vm4, %v646_v21, %v639_v33 }
 0x370   :  { %v652_v36 = vadd.f32 %v650_v35, %v618_v34 }
 0x372   :  { %654 = vst.msk [vmem:[#allocation12] sm:$0x3] %vm91_vm1, %v652_v36 }
 0x373   :  { %857 = shalt.err (!%p854_p5)
}
 0x374   :  { %664 = dma.vmem_to_hbm [thread:$0]  %s662_s12, 32, %s1081_s13, [#allocation8]  }
 0x375   :  { %870 = dma.done.wait [#allocation8], 32  }
 0x376   :  { %871 = vsyncadd [#allocation8], 4294967264 }
 0x377   :  { %668 = vsyncpa [#allocation7], 1 }
 0x378   :  { %669 = vsyncpa [#allocation10], 1 }
 0x379   :  { %670 = vsyncpa [#allocation8], 1 }

</bundles_post_ra>
